<compile_context>
chip_gen: v5e
topology: v5e:2x2
jax: 0.10.0
libtpu: 0.0.40
codegen_flags: <defaults>
</compile_context>

<pallas_src>
import functools

import jax
import jax.numpy as jnp
from jax import lax
from jax.experimental import pallas as pl
from jax.experimental.pallas import tpu as pltpu

TEMPERATURE = 0.1
_EPS = 1e-12  # F.normalize eps (clamp applied to ||x||, i.e. eps^2 on the squared norm)


def _make_kernel(B, TM, inv_temp, operand_dtype):
    inv_2b = 0.5 / float(B)
    eps_sq = _EPS * _EPS

    def kernel(text_ref, img_ref, loss_ref,
               tn_ref, col_max_ref, col_sum_ref, row_acc_ref, diag_acc_ref):
        i = pl.program_id(0)
        n_tiles = pl.num_programs(0)

        @pl.when(i == 0)
        def _init():
            # Normalize text once; keep it in the input dtype for the MXU.
            t32 = text_ref[...].astype(jnp.float32)
            t_scale = lax.rsqrt(
                jnp.maximum(jnp.sum(t32 * t32, axis=1, keepdims=True), eps_sq))
            tn_ref[...] = (t32 * t_scale).astype(tn_ref.dtype)
            col_max_ref[...] = jnp.full_like(col_max_ref, -jnp.inf)
            col_sum_ref[...] = jnp.zeros_like(col_sum_ref)
            row_acc_ref[...] = jnp.zeros_like(row_acc_ref)
            diag_acc_ref[...] = jnp.zeros_like(diag_acc_ref)

        # Normalize the current image row-tile; fold 1/temperature into its scale.
        v32 = img_ref[...].astype(jnp.float32)                              # (TM, D)
        v_scale = lax.rsqrt(
            jnp.maximum(jnp.sum(v32 * v32, axis=1, keepdims=True), eps_sq)) * inv_temp
        vn32 = v32 * v_scale                                                # f32, scaled by 1/T
        vn = vn32.astype(operand_dtype)                                     # MXU lhs

        # (TM, B) logits tile: contraction over D expressed as rhs-transposed
        # (no explicit XLU transpose of the text matrix).
        logits = lax.dot_general(
            vn, tn_ref[...],
            dimension_numbers=(((1,), (1,)), ((), ())),
            preferred_element_type=jnp.float32)                             # (TM, B) f32

        # Row direction (image -> text): all columns present, LSE exact per tile.
        row_max = jnp.max(logits, axis=1, keepdims=True)                    # (TM, 1)
        lse_rows = row_max + jnp.log(
            jnp.sum(jnp.exp(logits - row_max), axis=1, keepdims=True))      # (TM, 1)
        row_acc_ref[...] += jnp.sum(lse_rows, keepdims=True)                # (1, 1)

        # Diagonal (labels = arange(B)) contribution: trace restricted to this row-tile.
        row_start = pl.multiple_of(i * TM, TM)
        tn_match = tn_ref[pl.ds(row_start, TM), :].astype(jnp.float32)      # (TM, D)
        diag_acc_ref[...] += jnp.sum(vn32 * tn_match, keepdims=True)        # (1, 1)

        # Column direction (text -> image): online max/sum across row-tiles, no transpose.
        tile_max = jnp.max(logits, axis=0, keepdims=True)                   # (1, B)
        new_max = jnp.maximum(col_max_ref[...], tile_max)
        col_sum_ref[...] = (col_sum_ref[...] * jnp.exp(col_max_ref[...] - new_max)
                            + jnp.sum(jnp.exp(logits - new_max), axis=0, keepdims=True))
        col_max_ref[...] = new_max

        @pl.when(i == n_tiles - 1)
        def _finalize():
            lse_cols = col_max_ref[...] + jnp.log(col_sum_ref[...])         # (1, B)
            total = (row_acc_ref[...] + jnp.sum(lse_cols, keepdims=True)
                     - 2.0 * diag_acc_ref[...]) * inv_2b                    # (1, 1)
            loss_ref[0, 0] = total[0, 0]

    return kernel


def _pick_row_tile(B):
    # 256-multiples match v6e's 2x256x256 MXU; 128 for v5e-style alignment; tiny
    # batches fall back to a single full block.
    for tm in (256, 128):
        if B % tm == 0:
            return tm
    return B


@functools.partial(jax.jit, static_argnames=("temperature",))
def contrastive_loss(pooled_text, pooled_image, temperature=TEMPERATURE):
    """pooled_text: (B, D), pooled_image: (B, D) -> scalar loss (float32)."""
    B, D = pooled_text.shape
    assert pooled_image.shape == (B, D)
    dtype = pooled_image.dtype
    TM = _pick_row_tile(B)
    n_tiles = B // TM

    kernel = _make_kernel(B, TM, 1.0 / float(temperature), dtype)

    itemsize = jnp.dtype(dtype).itemsize
    cost = pl.CostEstimate(
        flops=2 * B * B * D + 8 * B * D,        # matmul + normalization
        transcendentals=2 * B * B + 4 * B,      # exp over both directions, logs, rsqrt
        bytes_accessed=2 * B * D * itemsize + 4,
    )
    # VMEM budget: text block + tn scratch + double-buffered image tiles
    # + per-tile logits/exp temporaries + column accumulators.
    vmem_est = (2 * B * D * itemsize
                + 2 * TM * D * itemsize
                + 4 * TM * B * 4
                + 4 * B * 4
                + (1 << 20))
    vmem_limit = int(min(max(vmem_est, 32 << 20), 64 << 20))

    out = pl.pallas_call(
        kernel,
        out_shape=jax.ShapeDtypeStruct((1, 1), jnp.float32),
        grid_spec=pltpu.PrefetchScalarGridSpec(
            num_scalar_prefetch=0,
            grid=(n_tiles,),
            in_specs=[
                pl.BlockSpec((B, D), lambda i: (0, 0)),    # text: resident, fetched once
                pl.BlockSpec((TM, D), lambda i: (i, 0)),   # image row tile (pipelined)
            ],
            out_specs=pl.BlockSpec((1, 1), lambda i: (0, 0), memory_space=pltpu.SMEM),
            scratch_shapes=[
                pltpu.VMEM((B, D), dtype),         # normalized text (MXU rhs)
                pltpu.VMEM((1, B), jnp.float32),   # running column max
                pltpu.VMEM((1, B), jnp.float32),   # running column sum-exp
                pltpu.VMEM((1, 1), jnp.float32),   # sum of row LSEs
                pltpu.VMEM((1, 1), jnp.float32),   # diagonal (trace) accumulator
            ],
        ),
        compiler_params=pltpu.CompilerParams(
            dimension_semantics=("arbitrary",),
            vmem_limit_bytes=vmem_limit,
        ),
        cost_estimate=cost,
    )(pooled_text, pooled_image)
    return out[0, 0]


def _reference_loss(pooled_text, pooled_image, temperature=TEMPERATURE):
    t = pooled_text.astype(jnp.float32)
    v = pooled_image.astype(jnp.float32)
    tn = t / jnp.maximum(jnp.linalg.norm(t, axis=1, keepdims=True), _EPS)
    vn = v / jnp.maximum(jnp.linalg.norm(v, axis=1, keepdims=True), _EPS)
    logits = vn @ tn.T / temperature
    labels = jnp.arange(logits.shape[0])

    def ce(lg):
        lse = jax.nn.logsumexp(lg, axis=1)
        picked = lg[jnp.arange(lg.shape[0]), labels]
        return jnp.mean(lse - picked)

    return (ce(logits) + ce(logits.T)) / 2.0


if __name__ == "__main__":
    B, D = 8, 32
    key = jax.random.PRNGKey(0)
    k_t, k_i = jax.random.split(key)
    pooled_text = jax.random.normal(k_t, (B, D), dtype=jnp.float32)
    pooled_image = jax.random.normal(k_i, (B, D), dtype=jnp.float32)

    loss = contrastive_loss(pooled_text, pooled_image)
    loss = jax.block_until_ready(loss)

    ref = _reference_loss(pooled_text, pooled_image)
    assert jnp.allclose(loss, ref, atol=1e-4, rtol=1e-4), (loss, ref)

    print("KERNEL_OK")
</pallas_src>

<mosaic_0001>
module attributes {stable_mosaic.version = 11 : i64} {
  func.func @kernel(%arg0: i32, %arg1: memref<8x32xf32, #tpu.memory_space<vmem>>, %arg2: memref<8x32xf32, #tpu.memory_space<vmem>>, %arg3: memref<1x1xf32, #tpu.memory_space<smem>>, %arg4: memref<8x32xf32, #tpu.memory_space<vmem>>, %arg5: memref<1x8xf32, #tpu.memory_space<vmem>>, %arg6: memref<1x8xf32, #tpu.memory_space<vmem>>, %arg7: memref<1x1xf32, #tpu.memory_space<vmem>>, %arg8: memref<1x1xf32, #tpu.memory_space<vmem>>) attributes {dimension_semantics = [#tpu.dimension_semantics<arbitrary>], iteration_bounds = array<i64: 1>, scalar_prefetch = 0 : i64, scratch_operands = 5 : i64, tpu.core_type = #tpu.core_type<tc>, window_params = [{pipeline_mode = #tpu.pipeline_mode<synchronous>, transform_indices = @transform_0, window_bounds = array<i64: 8, 32>}, {transform_indices = @transform_1, window_bounds = array<i64: 8, 32>}, {transform_indices = @transform_2, window_bounds = array<i64: 1, 1>}]} {
    %c0_i32 = arith.constant 0 : i32
    %0 = arith.cmpi eq, %arg0, %c0_i32 : i32
    %1 = arith.extui %0 : i1 to i32
    %c0_i32_0 = arith.constant 0 : i32
    %2 = arith.cmpi ne, %1, %c0_i32_0 : i32
    scf.if %2 {
      %c0_34 = arith.constant 0 : index
      %c0_35 = arith.constant 0 : index
      %66 = vector.load %arg1[%c0_34, %c0_35] : memref<8x32xf32, #tpu.memory_space<vmem>>, vector<8x32xf32>
      %67 = arith.mulf %66, %66 : vector<8x32xf32>
      %cst_36 = arith.constant dense<0.000000e+00> : vector<8xf32>
      %68 = vector.multi_reduction <add>, %67, %cst_36 [1] : vector<8x32xf32> to vector<8xf32>
      %69 = vector.shape_cast %68 : vector<8xf32> to vector<8x1xf32>
      %cst_37 = arith.constant 1.000000e-24 : f32
      %70 = vector.broadcast %cst_37 : f32 to vector<8x1xf32>
      %71 = arith.maximumf %69, %70 : vector<8x1xf32>
      %72 = math.rsqrt %71 : vector<8x1xf32>
      %73 = vector.broadcast %72 : vector<8x1xf32> to vector<8x32xf32>
      %74 = arith.mulf %66, %73 : vector<8x32xf32>
      %c0_38 = arith.constant 0 : index
      %c0_39 = arith.constant 0 : index
      %75 = vector.load %arg4[%c0_38, %c0_39] : memref<8x32xf32, #tpu.memory_space<vmem>>, vector<8x32xf32>
      tpu.vector_store %arg4[%c0_38, %c0_39], %74 {strides = array<i32>} : memref<8x32xf32, #tpu.memory_space<vmem>>, vector<8x32xf32>,
      %cst_40 = arith.constant 0xFF800000 : f32
      %76 = vector.broadcast %cst_40 : f32 to vector<1x8xf32>
      %c0_41 = arith.constant 0 : index
      %c0_42 = arith.constant 0 : index
      %77 = vector.load %arg5[%c0_41, %c0_42] : memref<1x8xf32, #tpu.memory_space<vmem>>, vector<1x8xf32>
      tpu.vector_store %arg5[%c0_41, %c0_42], %76 {strides = array<i32>} : memref<1x8xf32, #tpu.memory_space<vmem>>, vector<1x8xf32>,
      %cst_43 = arith.constant 0.000000e+00 : f32
      %78 = vector.broadcast %cst_43 : f32 to vector<1x8xf32>
      %c0_44 = arith.constant 0 : index
      %c0_45 = arith.constant 0 : index
      %79 = vector.load %arg6[%c0_44, %c0_45] : memref<1x8xf32, #tpu.memory_space<vmem>>, vector<1x8xf32>
      tpu.vector_store %arg6[%c0_44, %c0_45], %78 {strides = array<i32>} : memref<1x8xf32, #tpu.memory_space<vmem>>, vector<1x8xf32>,
      %cst_46 = arith.constant 0.000000e+00 : f32
      %80 = vector.broadcast %cst_46 : f32 to vector<1x1xf32>
      %c0_47 = arith.constant 0 : index
      %c0_48 = arith.constant 0 : index
      %81 = vector.load %arg7[%c0_47, %c0_48] : memref<1x1xf32, #tpu.memory_space<vmem>>, vector<1x1xf32>
      tpu.vector_store %arg7[%c0_47, %c0_48], %80 {strides = array<i32>} : memref<1x1xf32, #tpu.memory_space<vmem>>, vector<1x1xf32>,
      %cst_49 = arith.constant 0.000000e+00 : f32
      %82 = vector.broadcast %cst_49 : f32 to vector<1x1xf32>
      %c0_50 = arith.constant 0 : index
      %c0_51 = arith.constant 0 : index
      %83 = vector.load %arg8[%c0_50, %c0_51] : memref<1x1xf32, #tpu.memory_space<vmem>>, vector<1x1xf32>
      tpu.vector_store %arg8[%c0_50, %c0_51], %82 {strides = array<i32>} : memref<1x1xf32, #tpu.memory_space<vmem>>, vector<1x1xf32>,
    } else {
    }
    %c0 = arith.constant 0 : index
    %c0_1 = arith.constant 0 : index
    %3 = vector.load %arg2[%c0, %c0_1] : memref<8x32xf32, #tpu.memory_space<vmem>>, vector<8x32xf32>
    %4 = arith.mulf %3, %3 : vector<8x32xf32>
    %cst = arith.constant dense<0.000000e+00> : vector<8xf32>
    %5 = vector.multi_reduction <add>, %4, %cst [1] : vector<8x32xf32> to vector<8xf32>
    %6 = vector.shape_cast %5 : vector<8xf32> to vector<8x1xf32>
    %cst_2 = arith.constant 1.000000e-24 : f32
    %7 = vector.broadcast %cst_2 : f32 to vector<8x1xf32>
    %8 = arith.maximumf %6, %7 : vector<8x1xf32>
    %9 = math.rsqrt %8 : vector<8x1xf32>
    %cst_3 = arith.constant 1.000000e+01 : f32
    %10 = vector.broadcast %cst_3 : f32 to vector<8x1xf32>
    %11 = arith.mulf %9, %10 : vector<8x1xf32>
    %12 = vector.broadcast %11 : vector<8x1xf32> to vector<8x32xf32>
    %13 = arith.mulf %3, %12 : vector<8x32xf32>
    %c0_4 = arith.constant 0 : index
    %c0_5 = arith.constant 0 : index
    %14 = vector.load %arg4[%c0_4, %c0_5] : memref<8x32xf32, #tpu.memory_space<vmem>>, vector<8x32xf32>
    %cst_6 = arith.constant dense<0.000000e+00> : vector<8x8xf32>
    %15 = tpu.matmul %13, %14, %cst_6 {dimension_numbers = #tpu.dot_dimension_numbers<[1], [1], [0], [0], [0, 0, 1, 0], [], []>} : vector<8x32xf32>, vector<8x32xf32>, vector<8x8xf32> -> vector<8x8xf32>
    %cst_7 = arith.constant dense<0xFF800000> : vector<8xf32>
    %16 = vector.multi_reduction <maximumf>, %15, %cst_7 [1] : vector<8x8xf32> to vector<8xf32>
    %17 = vector.shape_cast %16 : vector<8xf32> to vector<8x1xf32>
    %18 = vector.broadcast %17 : vector<8x1xf32> to vector<8x8xf32>
    %19 = arith.subf %15, %18 : vector<8x8xf32>
    %20 = math.exp %19 : vector<8x8xf32>
    %cst_8 = arith.constant dense<0.000000e+00> : vector<8xf32>
    %21 = vector.multi_reduction <add>, %20, %cst_8 [1] : vector<8x8xf32> to vector<8xf32>
    %22 = vector.shape_cast %21 : vector<8xf32> to vector<8x1xf32>
    %23 = math.log %22 : vector<8x1xf32>
    %24 = arith.addf %17, %23 : vector<8x1xf32>
    %c0_9 = arith.constant 0 : index
    %c0_10 = arith.constant 0 : index
    %25 = vector.load %arg7[%c0_9, %c0_10] : memref<1x1xf32, #tpu.memory_space<vmem>>, vector<1x1xf32>
    %26 = vector.shape_cast %24 : vector<8x1xf32> to vector<1x8x1xf32>
    %cst_11 = arith.constant dense<0.000000e+00> : vector<1xf32>
    %27 = vector.multi_reduction <add>, %26, %cst_11 [1, 2] : vector<1x8x1xf32> to vector<1xf32>
    %28 = vector.shape_cast %27 : vector<1xf32> to vector<1x1x1xf32>
    %29 = vector.extract %28[0, 0, 0] : f32 from vector<1x1x1xf32>
    %30 = vector.broadcast %29 : f32 to vector<1x1xf32>
    %31 = arith.addf %25, %30 : vector<1x1xf32>
    %c0_12 = arith.constant 0 : index
    %c0_13 = arith.constant 0 : index
    %32 = vector.load %arg7[%c0_12, %c0_13] : memref<1x1xf32, #tpu.memory_space<vmem>>, vector<1x1xf32>
    tpu.vector_store %arg7[%c0_12, %c0_13], %31 {strides = array<i32>} : memref<1x1xf32, #tpu.memory_space<vmem>>, vector<1x1xf32>,
    %c8_i32 = arith.constant 8 : i32
    %33 = arith.muli %arg0, %c8_i32 : i32
    %34 = tpu.assume_multiple %33, 8 : i32
    %35 = arith.index_cast %34 : i32 to index
    %c0_14 = arith.constant 0 : index
    %36 = vector.load %arg4[%35, %c0_14] : memref<8x32xf32, #tpu.memory_space<vmem>>, vector<8x32xf32>
    %c0_15 = arith.constant 0 : index
    %c0_16 = arith.constant 0 : index
    %37 = vector.load %arg8[%c0_15, %c0_16] : memref<1x1xf32, #tpu.memory_space<vmem>>, vector<1x1xf32>
    %38 = arith.mulf %13, %36 : vector<8x32xf32>
    %39 = vector.shape_cast %38 : vector<8x32xf32> to vector<1x8x32xf32>
    %cst_17 = arith.constant dense<0.000000e+00> : vector<1xf32>
    %40 = vector.multi_reduction <add>, %39, %cst_17 [1, 2] : vector<1x8x32xf32> to vector<1xf32>
    %41 = vector.shape_cast %40 : vector<1xf32> to vector<1x1x1xf32>
    %42 = vector.extract %41[0, 0, 0] : f32 from vector<1x1x1xf32>
    %43 = vector.broadcast %42 : f32 to vector<1x1xf32>
    %44 = arith.addf %37, %43 : vector<1x1xf32>
    %c0_18 = arith.constant 0 : index
    %c0_19 = arith.constant 0 : index
    %45 = vector.load %arg8[%c0_18, %c0_19] : memref<1x1xf32, #tpu.memory_space<vmem>>, vector<1x1xf32>
    tpu.vector_store %arg8[%c0_18, %c0_19], %44 {strides = array<i32>} : memref<1x1xf32, #tpu.memory_space<vmem>>, vector<1x1xf32>,
    %cst_20 = arith.constant dense<0xFF800000> : vector<8xf32>
    %46 = vector.multi_reduction <maximumf>, %15, %cst_20 [0] : vector<8x8xf32> to vector<8xf32>
    %47 = vector.shape_cast %46 : vector<8xf32> to vector<1x8xf32>
    %c0_21 = arith.constant 0 : index
    %c0_22 = arith.constant 0 : index
    %48 = vector.load %arg5[%c0_21, %c0_22] : memref<1x8xf32, #tpu.memory_space<vmem>>, vector<1x8xf32>
    %49 = arith.maximumf %48, %47 : vector<1x8xf32>
    %c0_23 = arith.constant 0 : index
    %c0_24 = arith.constant 0 : index
    %50 = vector.load %arg6[%c0_23, %c0_24] : memref<1x8xf32, #tpu.memory_space<vmem>>, vector<1x8xf32>
    %c0_25 = arith.constant 0 : index
    %c0_26 = arith.constant 0 : index
    %51 = vector.load %arg5[%c0_25, %c0_26] : memref<1x8xf32, #tpu.memory_space<vmem>>, vector<1x8xf32>
    %52 = arith.subf %51, %49 : vector<1x8xf32>
    %53 = math.exp %52 : vector<1x8xf32>
    %54 = arith.mulf %50, %53 : vector<1x8xf32>
    %55 = vector.broadcast %49 : vector<1x8xf32> to vector<8x8xf32>
    %56 = arith.subf %15, %55 : vector<8x8xf32>
    %57 = math.exp %56 : vector<8x8xf32>
    %cst_27 = arith.constant dense<0.000000e+00> : vector<8xf32>
    %58 = vector.multi_reduction <add>, %57, %cst_27 [0] : vector<8x8xf32> to vector<8xf32>
    %59 = vector.shape_cast %58 : vector<8xf32> to vector<1x8xf32>
    %60 = arith.addf %54, %59 : vector<1x8xf32>
    %c0_28 = arith.constant 0 : index
    %c0_29 = arith.constant 0 : index
    %61 = vector.load %arg6[%c0_28, %c0_29] : memref<1x8xf32, #tpu.memory_space<vmem>>, vector<1x8xf32>
    tpu.vector_store %arg6[%c0_28, %c0_29], %60 {strides = array<i32>} : memref<1x8xf32, #tpu.memory_space<vmem>>, vector<1x8xf32>,
    %c0_30 = arith.constant 0 : index
    %c0_31 = arith.constant 0 : index
    %62 = vector.load %arg5[%c0_30, %c0_31] : memref<1x8xf32, #tpu.memory_space<vmem>>, vector<1x8xf32>
    tpu.vector_store %arg5[%c0_30, %c0_31], %49 {strides = array<i32>} : memref<1x8xf32, #tpu.memory_space<vmem>>, vector<1x8xf32>,
    %c0_i32_32 = arith.constant 0 : i32
    %63 = arith.cmpi eq, %arg0, %c0_i32_32 : i32
    %64 = arith.extui %63 : i1 to i32
    %c0_i32_33 = arith.constant 0 : i32
    %65 = arith.cmpi ne, %64, %c0_i32_33 : i32
    scf.if %65 {
      %c0_34 = arith.constant 0 : index
      %c0_35 = arith.constant 0 : index
      %66 = vector.load %arg5[%c0_34, %c0_35] : memref<1x8xf32, #tpu.memory_space<vmem>>, vector<1x8xf32>
      %c0_36 = arith.constant 0 : index
      %c0_37 = arith.constant 0 : index
      %67 = vector.load %arg6[%c0_36, %c0_37] : memref<1x8xf32, #tpu.memory_space<vmem>>, vector<1x8xf32>
      %68 = math.log %67 : vector<1x8xf32>
      %69 = arith.addf %66, %68 : vector<1x8xf32>
      %c0_38 = arith.constant 0 : index
      %c0_39 = arith.constant 0 : index
      %70 = vector.load %arg7[%c0_38, %c0_39] : memref<1x1xf32, #tpu.memory_space<vmem>>, vector<1x1xf32>
      %71 = vector.shape_cast %69 : vector<1x8xf32> to vector<1x1x8xf32>
      %cst_40 = arith.constant dense<0.000000e+00> : vector<1xf32>
      %72 = vector.multi_reduction <add>, %71, %cst_40 [1, 2] : vector<1x1x8xf32> to vector<1xf32>
      %73 = vector.shape_cast %72 : vector<1xf32> to vector<1x1x1xf32>
      %74 = vector.extract %73[0, 0, 0] : f32 from vector<1x1x1xf32>
      %75 = vector.broadcast %74 : f32 to vector<1x1xf32>
      %76 = arith.addf %70, %75 : vector<1x1xf32>
      %c0_41 = arith.constant 0 : index
      %c0_42 = arith.constant 0 : index
      %77 = vector.load %arg8[%c0_41, %c0_42] : memref<1x1xf32, #tpu.memory_space<vmem>>, vector<1x1xf32>
      %cst_43 = arith.constant 2.000000e+00 : f32
      %78 = vector.broadcast %cst_43 : f32 to vector<1x1xf32>
      %79 = arith.mulf %78, %77 : vector<1x1xf32>
      %80 = arith.subf %76, %79 : vector<1x1xf32>
      %cst_44 = arith.constant 6.250000e-02 : f32
      %81 = vector.broadcast %cst_44 : f32 to vector<1x1xf32>
      %82 = arith.mulf %80, %81 : vector<1x1xf32>
      %83 = vector.extract %82[0, 0] : f32 from vector<1x1xf32>
      %c0_45 = arith.constant 0 : index
      %c0_46 = arith.constant 0 : index
      %84 = memref.load %arg3[%c0_45, %c0_46] : memref<1x1xf32, #tpu.memory_space<smem>>
      memref.store %83, %arg3[%c0_45, %c0_46] : memref<1x1xf32, #tpu.memory_space<smem>>
    } else {
    }
    return
  }
  func.func @transform_0(%arg0: i32) -> (i32, i32) {
    %c0_i32 = arith.constant 0 : i32
    %c0_i32_0 = arith.constant 0 : i32
    %c0_i32_1 = arith.constant 0 : i32
    return %c0_i32, %c0_i32_0 : i32, i32
  }
  func.func @transform_1(%arg0: i32) -> (i32, i32) {
    %c0_i32 = arith.constant 0 : i32
    %c0_i32_0 = arith.constant 0 : i32
    return %arg0, %c0_i32 : i32, i32
  }
  func.func @transform_2(%arg0: i32) -> (i32, i32) {
    %c0_i32 = arith.constant 0 : i32
    %c0_i32_0 = arith.constant 0 : i32
    %c0_i32_1 = arith.constant 0 : i32
    return %c0_i32, %c0_i32_0 : i32, i32
  }
}

</mosaic_0001>

<bundles_post_ra>
// kernel: contrastive_loss.1
= control target key start
LH: loop header
LB: loop body
LE: loop exit
PB: predicated region body
PF: predicated region fallthrough
CT: control target
= control target key end

     0   :  { %7 = vsyncpa [#allocation8], 0  ;;  %s382_s0 = inlined_call_operand.hbm [shape: f32[8,32], index: 0, kind: input, shape index: {}]   ;;  %s383_s1 = inlined_call_operand.hbm [shape: f32[8,32], index: 1, kind: input, shape index: {}]   ;;  %s384_s2 = inlined_call_operand.hbm [shape: f32[1,1], index: 2, kind: output, shape index: {}]  }
   0x1   :  { %8 = vsyncpa [#allocation11], 0 }
   0x2   :  { %9 = vsyncpa [#allocation9], 0  ;;  %s15_s11 = sshll.u32 %s382_s0, 4  ;;  %s332_s12 = smov [#allocation7]   ;;  %s16_s11 = int_to_ptr.hbm [resolvable:$true] %s15_s11 }
   0x3   :  { %s17_s13 = sshll.u32 %s332_s12, 4  ;;  %s26_s16 = sshll.u32 %s383_s1, 4  ;;  %s18_s13 = int_to_ptr.vmem [resolvable:$true] %s17_s13  ;;  %s27_s16 = int_to_ptr.hbm [resolvable:$true] %s26_s16 }
   0x4   :  { %20 = dma.hbm_to_vmem [thread:$0]  %s16_s11, 128, %s18_s13, [#allocation8]  }
   0x5   :  { %s333_s17 = smov [#allocation10]  }
   0x6   :  { %s28_s18 = sshll.u32 %s333_s17, 4  ;;  %s29_s18 = int_to_ptr.vmem [resolvable:$true] %s28_s18 }
   0x7   :  { %31 = dma.hbm_to_vmem [thread:$0]  %s27_s16, 128, %s29_s18, [#allocation11]  }
   0x8   :  { %326 = dma.done.wait [#allocation8], 128  }
   0x9   :  { %327 = vsyncadd [#allocation8], 4294967168 }
   0xa   :  { %328 = dma.done.wait [#allocation11], 128  }
   0xb   :  { %329 = vsyncadd [#allocation11], 4294967168  ;;  %v44_v0 = vld [vmem:[#allocation7] sm:$0xff]  ;;  %vm46_vm0 = vcmask 261120   ;;  %v69_v2 = vld [vmem:[#allocation10] sm:$0xff]  ;;  %vm63_vm1 = vcmask 57344  }
   0xc   :  { %v45_v1 = vmul.f32 %v44_v0, %v44_v0  ;;  %v70_v4 = vmul.f32 %v69_v2, %v69_v2  ;;  %v334_v8 = vmov -inf   ;;  %v335_v9 = vmov 0.0   ;;  %s225_s22 = sshll.u32 %s384_s2, 4  ;;  %s336_s24 = smov [#allocation12]   ;;  %s226_s22 = int_to_ptr.hbm [resolvable:$true] %s225_s22 }
   0xd   :  { %64 = vst.msk [vmem:[#allocation3] sm:$0x1] %vm63_vm1, %v334_v8  ;;  %vm115_vm8 = vcmask 64512   ;;  %vm129_vm9 = vcmask 7168   ;;  %vm66_vm10 = vcmask 0  }
   0xe   :  { %v47_v3 = vsel %vm46_vm0, %v45_v1, 0.0  ;;  %v72_v5 = vsel %vm46_vm0, %v70_v4, 0.0  ;;  %65 = vst.msk [vmem:[#allocation4] sm:$0x1] %vm63_vm1, %v335_v9 }
   0xf   :  { %48 = vadd.xlane.f32.xlu0 %v47_v3  ;;  %67 = vst.msk [vmem:[#allocation5] sm:$0x1] %vm66_vm10, %v335_v9 }
  0x10   :  { %68 = vst.msk [vmem:[#allocation6] sm:$0x1] %vm66_vm10, %v335_v9 }
  0x14   :  { %v168_v38 = vld [vmem:[#allocation3] sm:$0x1] }
  0x15   :  { %v170_v53 = vld [vmem:[#allocation4] sm:$0x1] }
  0x17   :  { %73 = vadd.xlane.f32.xlu0 %v72_v5 }
  0x82   :  { %v49_v6 = vpop.xlane.xlu0 %48 }
  0x83   :  { %v50_v7 = vmax.f32 %v49_v6, 1e-24 }
  0x85   :  { %252 = vrsqrt.f32 %v50_v7  ;;  %vm57_vm3 = vweird.f32 %v50_v7 }
  0x8a   :  { %v74_v10 = vpop.xlane.xlu0 %73 }
  0x8b   :  { %v253_v11 = vpop.eup %252  ;;  %v75_v12 = vmax.f32 %v74_v10, 1e-24 }
  0x8c   :  { %v52_v13 = vmul.f32 %v253_v11, %v50_v7  ;;  %vm58_vm2 = vweird.f32 %v253_v11 }
  0x8d   :  { %254 = vrsqrt.f32 %v75_v12  ;;  %vm59_vm4 = vmor %vm57_vm3, %vm58_vm2  ;;  %vm82_vm6 = vweird.f32 %v75_v12 }
  0x8e   :  { %v53_v14 = vmul.f32 %v253_v11, %v52_v13 }
  0x90   :  { %v54_v15 = vmul.f32 0.5, %v53_v14 }
  0x92   :  { %v55_v16 = vsub.f32 1.5, %v54_v15 }
  0x93   :  { %v255_v17 = vpop.eup %254 }
  0x94   :  { %v56_v18 = vmul.f32 %v253_v11, %v55_v16  ;;  %v77_v19 = vmul.f32 %v255_v17, %v75_v12  ;;  %vm83_vm5 = vweird.f32 %v255_v17 }
  0x95   :  { %vm84_vm7 = vmor %vm82_vm6, %vm83_vm5 }
  0x96   :  { %v60_v20 = vsel %vm59_vm4, %v253_v11, %v56_v18  ;;  %v78_v21 = vmul.f32 %v255_v17, %v77_v19 }
  0x97   :  { %v61_v22 = vmul.f32 %v60_v20, %v44_v0 }
  0x98   :  { %v79_v23 = vmul.f32 0.5, %v78_v21 }
  0x99   :  { %62 = vst.msk [vmem:[#allocation2] sm:$0xff] %vm46_vm0, %v61_v22 }
  0x9a   :  { %v80_v24 = vsub.f32 1.5, %v79_v23 }
  0x9c   :  { %v81_v25 = vmul.f32 %v255_v17, %v80_v24 }
  0x9e   :  { %v85_v26 = vsel %vm84_vm7, %v255_v17, %v81_v25 }
  0x9f   :  { %v86_v27 = vmul.f32 10.0, %v85_v26 }
  0xa0   :  { %v88_v28 = vld [vmem:[#allocation2] sm:$0xff] }
  0xa1   :  { %237 = vmatpush.xpose.msk.msra.mxu0 %vm46_vm0, %v88_v28  ;;  %v87_v29 = vmul.f32 %v86_v27, %v69_v2 }
  0xa3   :  { %v148_v30 = vmul.f32 %v88_v28, %v87_v29 }
  0xa4   :  { %238 = vmatmul.msk.f32.vlgmr.msra.gmra.mxu0 %vm46_vm0, %v87_v29 }
  0xa5   :  { %v149_v11 = vsel %vm46_vm0, %v148_v30, 0.0 }
 0x121   :  { %v112_v31 = vpop.f32.mrf.mxu0 }
 0x122   :  { %v116_v32 = vsel %vm115_vm8, %v112_v31, -inf }
 0x123   :  { %v162_v33 = vrot.slane %v116_v32, 4  ;;  %117 = vmax.xlane.f32.xlu1 %v116_v32 }
 0x125   :  { %v163_v34 = vmax.f32 %v116_v32, %v162_v33  ;;  %v128_v32 = vld [vmem:[#allocation5] sm:$0x1] }
 0x127   :  { %v164_v35 = vrot.slane %v163_v34, 2 }
 0x129   :  { %v165_v36 = vmax.f32 %v163_v34, %v164_v35  ;;  %v147_v35 = vld [vmem:[#allocation6] sm:$0x1] }
 0x12b   :  { %v166_v37 = vrot.slane %v165_v36, 1 }
 0x12d   :  { %v167_v39 = vmax.f32 %v165_v36, %v166_v37 }
 0x12f   :  { %v169_v40 = vmax.f32 %v168_v38, %v167_v39 }
 0x131   :  { %v176_v41 = vperm.slane %v169_v40, 0  ;;  %191 = vst.msk [vmem:[#allocation3] sm:$0x1] %vm63_vm1, %v169_v40  ;;  %v171_v44 = vsub.f32 %v168_v38, %v169_v40 }
 0x133   :  { %v178_v42 = vsub.f32 %v112_v31, %v176_v41  ;;  %v172_v45 = vmul.f32 1.442695, %v171_v44 }
 0x135   :  { %v179_v43 = vmul.f32 1.442695, %v178_v42 }
 0x137   :  { %256 = vpow2.f32 %v179_v43 }
 0x138   :  { %258 = vpow2.f32 %v172_v45  ;;  %v195_v61 = vld [vmem:[#allocation3] sm:$0x1] }
 0x13d   :  { %v257_v46 = vpop.eup %256 }
 0x13e   :  { %v181_v47 = vsel %vm115_vm8, %v257_v46, 0.0  ;;  %v259_v52 = vpop.eup %258 }
 0x13f   :  { %v182_v48 = vrot.slane %v181_v47, 4  ;;  %v174_v55 = vmul.f32 %v259_v52, %v170_v53 }
 0x141   :  { %v183_v49 = vadd.f32 %v182_v48, %v181_v47 }
 0x143   :  { %v184_v50 = vrot.slane %v183_v49, 2 }
 0x145   :  { %v185_v51 = vadd.f32 %v184_v50, %v183_v49 }
 0x147   :  { %v186_v54 = vrot.slane %v185_v51, 1 }
 0x149   :  { %v187_v56 = vadd.f32 %v186_v54, %v185_v51 }
 0x14b   :  { %v188_v57 = vadd.f32 %v187_v56, %v174_v55 }
 0x14d   :  { %190 = vst.msk [vmem:[#allocation4] sm:$0x1] %vm63_vm1, %v188_v57 }
 0x154   :  { %v196_v58 = vld [vmem:[#allocation4] sm:$0x1] }
 0x155   :  { %260 = vlog2.f32 %v196_v58 }
 0x15b   :  { %v261_v59 = vpop.eup %260 }
 0x15c   :  { %v198_v60 = vmul.f32 0.6931472, %v261_v59 }
 0x15e   :  { %v199_v62 = vadd.f32 %v198_v60, %v195_v61 }
 0x160   :  { %v201_v63 = vsel %vm63_vm1, %v199_v62, 0.0 }
 0x161   :  { %202 = vadd.xlane.f32.xlu0 %v201_v63 }
 0x196   :  { %v118_v0 = vpop.xlane.xlu1 %117 }
 0x197   :  { %v119_v1 = vsub.f32 %v112_v31, %v118_v0 }
 0x199   :  { %v120_v2 = vmul.f32 1.442695, %v119_v1 }
 0x19b   :  { %262 = vpow2.f32 %v120_v2 }
 0x1a1   :  { %v263_v3 = vpop.eup %262 }
 0x1a2   :  { %v122_v4 = vsel %vm115_vm8, %v263_v3, 0.0 }
 0x1a3   :  { %123 = vadd.xlane.f32.xlu1 %v122_v4 }
 0x1d4   :  { %v203_v12 = vpop.xlane.xlu0 %202 }
 0x1d5   :  { %v204_v13 = vrot.slane %v203_v12, 4 }
 0x1d7   :  { %v205_v17 = vadd.f32 %v204_v13, %v203_v12 }
 0x1d9   :  { %v206_v20 = vrot.slane %v205_v17, 2 }
 0x1db   :  { %v207_v26 = vadd.f32 %v206_v20, %v205_v17 }
 0x1dd   :  { %v208_v29 = vrot.slane %v207_v26, 1 }
 0x1df   :  { %v209_v31 = vadd.f32 %v208_v29, %v207_v26 }
 0x216   :  { %v124_v5 = vpop.xlane.xlu1 %123 }
 0x217   :  { %264 = vlog2.f32 %v124_v5 }
 0x21d   :  { %v265_v6 = vpop.eup %264 }
 0x21e   :  { %v126_v7 = vmul.f32 0.6931472, %v265_v6 }
 0x220   :  { %v127_v8 = vadd.f32 %v126_v7, %v118_v0 }
 0x222   :  { %v130_v10 = vsel %vm129_vm9, %v127_v8, 0.0 }
 0x223   :  { %131 = vadd.xlane.f32.xlu2 %v130_v10 }
 0x22b   :  { %150 = vadd.xlane.f32.xlu2 %v149_v11 }
 0x296   :  { %v132_v14 = vpop.xlane.xlu2 %131 }
 0x297   :  { %v133_v15 = vrot.slane %v132_v14, 4 }
 0x299   :  { %v134_v16 = vadd.f32 %v133_v15, %v132_v14 }
 0x29b   :  { %v135_v18 = vrot.slane %v134_v16, 2 }
 0x29d   :  { %v136_v19 = vadd.f32 %v135_v18, %v134_v16 }
 0x29e   :  { %v151_v21 = vpop.xlane.xlu2 %150 }
 0x29f   :  { %v152_v22 = vrot.slane %v151_v21, 4  ;;  %v137_v23 = vrot.slane %v136_v19, 1 }
 0x2a1   :  { %v153_v24 = vadd.f32 %v152_v22, %v151_v21  ;;  %v138_v25 = vadd.f32 %v137_v23, %v136_v19 }
 0x2a3   :  { %v154_v27 = vrot.slane %v153_v24, 2  ;;  %239 = vpush %v138_v25 }
 0x2a5   :  { %v155_v28 = vadd.f32 %v154_v27, %v153_v24 }
 0x2a7   :  { %v156_v9 = vrot.slane %v155_v28, 1 }
 0x2a9   :  { %v157_v30 = vadd.f32 %v156_v9, %v155_v28 }
 0x2ab   :  { %241 = vpush %v157_v30 }
 0x2ac   :  { %243 = vpush %v209_v31 }
 0x2d4   :  { %s240_s0 = spop %239 }
 0x2d5   :  { %v140_v33 = vstv %s240_s0 }
 0x2d6   :  { %v141_v34 = vadd.f32 %v140_v33, %v128_v32 }
 0x2d8   :  { %143 = vst.msk [vmem:[#allocation5] sm:$0x1] %vm66_vm10, %v141_v34 }
 0x2dc   :  { %s242_s1 = spop %241 }
 0x2dd   :  { %v159_v36 = vstv %s242_s1  ;;  %s244_s19 = spop %243 }
 0x2de   :  { %v160_v37 = vadd.f32 %v159_v36, %v147_v35  ;;  %v211_v39 = vstv %s244_s19 }
 0x2df   :  { %v200_v38 = vld [vmem:[#allocation5] sm:$0x1] }
 0x2e0   :  { %161 = vst.msk [vmem:[#allocation6] sm:$0x1] %vm66_vm10, %v160_v37  ;;  %v212_v41 = vadd.f32 %v211_v39, %v200_v38 }
 0x2e7   :  { %v213_v40 = vld [vmem:[#allocation6] sm:$0x1] }
 0x2e8   :  { %v214_v42 = vmul.f32 2.0, %v213_v40 }
 0x2ea   :  { %v215_v43 = vsub.f32 %v212_v41, %v214_v42 }
 0x2ec   :  { %v216_v44 = vmul.f32 0.0625, %v215_v43 }
 0x2ee   :  { %245 = vpush %v216_v44 }
 0x31f   :  { %s246_s23 = spop %245 }
 0x320   :  { %219 = sst [smem:[#allocation12]] %s246_s23 }
 0x321   :  { %228 = dma.smem_to_hbm %s336_s24, 16, %s226_s22, [#allocation9]  }
 0x322   :  { %330 = dma.done.wait [#allocation9], 16  }
 0x323   :  { %331 = vsyncadd [#allocation9], 4294967280 }
 0x324   :  { %233 = sfence }
 0x325   :  { %234 = vsyncpa [#allocation8], 1 }
 0x326   :  { %235 = vsyncpa [#allocation11], 1 }
 0x327   :  { %236 = vsyncpa [#allocation9], 1 }

</bundles_post_ra>
